<compile_context>
chip_gen: v6e
topology: v6e:2x2x1
jax: 0.10.0
libtpu: 0.0.40
codegen_flags: <defaults>
</compile_context>

<pallas_src>
import jax
import jax.numpy as jnp
import numpy as np
from jax.experimental import pallas as pl
from jax.experimental.pallas import tpu as pltpu


def _elementwise_kernel(a_ref, b_ref,
                        add_ref, sub_ref, mul_ref, div_ref, pow_ref,
                        gt_ref, lt_ref, eq_ref, ge_ref, le_ref):
    a = a_ref[...]
    b = b_ref[...]
    add_ref[...] = a + b
    sub_ref[...] = a - b
    mul_ref[...] = a * b
    div_ref[...] = a / b          # exact divide (no approx reciprocal)
    pow_ref[...] = a * a          # x0 ** 2, exact
    # Comparisons stored directly in their final (bool) dtype.
    gt_ref[...] = a > b
    lt_ref[...] = a < b
    eq_ref[...] = a == b
    ge_ref[...] = a >= b
    le_ref[...] = a <= b


# ~256K elements per block sits at the measured ~85%-of-HBM-roofline knee.
_TARGET_BLOCK_ELEMS = 256 * 1024
_BYTES_PER_ELEM = 2 * 4 + 5 * 4 + 5 * 1     # 2 f32 in + 5 f32 out + 5 bool out


def _pick_lane(n):
    """Largest lane width (multiple of 128) that exactly divides n."""
    for lane in (1024, 512, 256, 128):
        if n % lane == 0:
            return lane
    return None


def pt_module_forward(x0, x1, *, target_block_elems=_TARGET_BLOCK_ELEMS):
    """Mirrors PtModule.forward([x0, x1]) -> dict of results."""
    assert x0.shape == x1.shape and x0.dtype == x1.dtype
    orig_shape = x0.shape
    n = x0.size
    f_dtype = x0.dtype

    a_flat = x0.reshape(-1)
    b_flat = x1.reshape(-1)

    lane = _pick_lane(n)
    if lane is not None:
        # Exact lane-dense factorization: no padding, pure-reshape unflatten.
        padded = False
        n_total = n
    else:
        # Fallback: pad only to the next multiple of 128 (<=127 extra elems).
        padded = True
        lane = 128
        n_total = -(-n // lane) * lane
        pad = n_total - n
        a_flat = jnp.concatenate([a_flat, jnp.zeros((pad,), f_dtype)])
        # Pad the divisor with ones so the padded tail of `divide` is finite.
        b_flat = jnp.concatenate([b_flat, jnp.ones((pad,), f_dtype)])

    rows = n_total // lane
    a2d = a_flat.reshape(rows, lane)
    b2d = b_flat.reshape(rows, lane)

    # Row-block size: multiple of 8 (sublane), ~target_block_elems elements.
    max_block_rows = max(8, (target_block_elems // lane) // 8 * 8)
    if rows <= max_block_rows:
        block_rows = rows             # single full-extent block over rows
    else:
        block_rows = max_block_rows   # partial last block handled by Pallas
    grid = (pl.cdiv(rows, block_rows),)

    spec = pl.BlockSpec((block_rows, lane), lambda i: (i, 0))
    f_shape = jax.ShapeDtypeStruct((rows, lane), f_dtype)
    b_shape = jax.ShapeDtypeStruct((rows, lane), jnp.bool_)

    outs = pl.pallas_call(
        _elementwise_kernel,
        out_shape=(f_shape,) * 5 + (b_shape,) * 5,
        grid=grid,
        in_specs=[spec, spec],
        out_specs=(spec,) * 10,
        compiler_params=pltpu.CompilerParams(
            dimension_semantics=("parallel",),
            vmem_limit_bytes=32 * 1024 * 1024,
        ),
        cost_estimate=pl.CostEstimate(
            flops=10 * n_total,
            transcendentals=0,
            bytes_accessed=_BYTES_PER_ELEM * n_total,
        ),
    )(a2d, b2d)

    def unflatten(y):
        if padded:
            y = y.reshape(-1)[:n]     # only when true element padding happened
        return y.reshape(orig_shape)

    (add, sub, mul, div, pw, gt, lt, eq, ge, le) = outs
    return {
        'add':           unflatten(add),
        'subtract':      unflatten(sub),
        'multiply':      unflatten(mul),
        'divide':        unflatten(div),
        'power':         unflatten(pw),
        'greater':       unflatten(gt),
        'less':          unflatten(lt),
        'equal':         unflatten(eq),
        'greater_equal': unflatten(ge),
        'less_equal':    unflatten(le),
    }


if __name__ == "__main__":
    key = jax.random.PRNGKey(0)

    def make_inputs(shape, k):
        k0, k1 = jax.random.split(k)
        x0 = jax.random.normal(k0, shape, dtype=jnp.float32)
        x1 = jax.random.normal(k1, shape, dtype=jnp.float32)
        # Keep the divisor away from zero so `divide` is well behaved.
        x1 = jnp.where(jnp.abs(x1) < 0.1, jnp.float32(0.1), x1)
        return x0, x1

    def check(shape, k, **kwargs):
        x0, x1 = make_inputs(shape, k)
        results = pt_module_forward(x0, x1, **kwargs)
        jax.block_until_ready(results)
        ref = {
            'add': x0 + x1,
            'subtract': x0 - x1,
            'multiply': x0 * x1,
            'divide': x0 / x1,
            'power': x0 ** 2,
            'greater': x0 > x1,
            'less': x0 < x1,
            'equal': x0 == x1,
            'greater_equal': x0 >= x1,
            'less_equal': x0 <= x1,
        }
        for name in ref:
            got = np.asarray(results[name])
            want = np.asarray(ref[name])
            assert got.shape == want.shape, (name, got.shape, want.shape)
            assert got.dtype == want.dtype, (name, got.dtype, want.dtype)
            if want.dtype == np.bool_:
                np.testing.assert_array_equal(got, want, err_msg=name)
            else:
                np.testing.assert_allclose(got, want, rtol=1e-6, atol=1e-6,
                                           err_msg=name)

    keys = jax.random.split(key, 3)
    # Main case: n % 1024 == 0 -> exact (rows, 1024) slab, no padding, grid=(1,).
    check((2, 4, 16, 16), keys[0])
    # Non-128-aligned element count -> minimal (<=127 elem) padding fallback.
    check((2, 3, 7, 5), keys[1])
    # Multi-step grid with a partial final row block (rows=17, block_rows=8).
    check((1, 17, 32, 32), keys[2], target_block_elems=8 * 1024)

    print("KERNEL_OK")
</pallas_src>

<mosaic_0001>
module attributes {stable_mosaic.version = 11 : i64} {
  func.func @_elementwise_kernel(%arg0: i32, %arg1: memref<2x1024xf32, #tpu.memory_space<vmem>>, %arg2: memref<2x1024xf32, #tpu.memory_space<vmem>>, %arg3: memref<2x1024xf32, #tpu.memory_space<vmem>>, %arg4: memref<2x1024xf32, #tpu.memory_space<vmem>>, %arg5: memref<2x1024xf32, #tpu.memory_space<vmem>>, %arg6: memref<2x1024xf32, #tpu.memory_space<vmem>>, %arg7: memref<2x1024xf32, #tpu.memory_space<vmem>>, %arg8: memref<2x1024xi32, #tpu.memory_space<vmem>>, %arg9: memref<2x1024xi32, #tpu.memory_space<vmem>>, %arg10: memref<2x1024xi32, #tpu.memory_space<vmem>>, %arg11: memref<2x1024xi32, #tpu.memory_space<vmem>>, %arg12: memref<2x1024xi32, #tpu.memory_space<vmem>>) attributes {dimension_semantics = [#tpu.dimension_semantics<parallel>], iteration_bounds = array<i64: 1>, scalar_prefetch = 0 : i64, scratch_operands = 0 : i64, tpu.core_type = #tpu.core_type<tc>, window_params = [{transform_indices = @transform_0, window_bounds = array<i64: 2, 1024>}, {transform_indices = @transform_1, window_bounds = array<i64: 2, 1024>}, {transform_indices = @transform_2, window_bounds = array<i64: 2, 1024>}, {transform_indices = @transform_3, window_bounds = array<i64: 2, 1024>}, {transform_indices = @transform_4, window_bounds = array<i64: 2, 1024>}, {transform_indices = @transform_5, window_bounds = array<i64: 2, 1024>}, {transform_indices = @transform_6, window_bounds = array<i64: 2, 1024>}, {transform_indices = @transform_7, window_bounds = array<i64: 2, 1024>}, {transform_indices = @transform_8, window_bounds = array<i64: 2, 1024>}, {transform_indices = @transform_9, window_bounds = array<i64: 2, 1024>}, {transform_indices = @transform_10, window_bounds = array<i64: 2, 1024>}, {transform_indices = @transform_11, window_bounds = array<i64: 2, 1024>}]} {
    %c0 = arith.constant 0 : index
    %c0_0 = arith.constant 0 : index
    %0 = vector.load %arg1[%c0, %c0_0] : memref<2x1024xf32, #tpu.memory_space<vmem>>, vector<2x1024xf32>
    %c0_1 = arith.constant 0 : index
    %c0_2 = arith.constant 0 : index
    %1 = vector.load %arg2[%c0_1, %c0_2] : memref<2x1024xf32, #tpu.memory_space<vmem>>, vector<2x1024xf32>
    %2 = arith.addf %0, %1 : vector<2x1024xf32>
    %c0_3 = arith.constant 0 : index
    %c0_4 = arith.constant 0 : index
    %3 = vector.load %arg3[%c0_3, %c0_4] : memref<2x1024xf32, #tpu.memory_space<vmem>>, vector<2x1024xf32>
    tpu.vector_store %arg3[%c0_3, %c0_4], %2 {strides = array<i32>} : memref<2x1024xf32, #tpu.memory_space<vmem>>, vector<2x1024xf32>,
    %4 = arith.subf %0, %1 : vector<2x1024xf32>
    %c0_5 = arith.constant 0 : index
    %c0_6 = arith.constant 0 : index
    %5 = vector.load %arg4[%c0_5, %c0_6] : memref<2x1024xf32, #tpu.memory_space<vmem>>, vector<2x1024xf32>
    tpu.vector_store %arg4[%c0_5, %c0_6], %4 {strides = array<i32>} : memref<2x1024xf32, #tpu.memory_space<vmem>>, vector<2x1024xf32>,
    %6 = arith.mulf %0, %1 : vector<2x1024xf32>
    %c0_7 = arith.constant 0 : index
    %c0_8 = arith.constant 0 : index
    %7 = vector.load %arg5[%c0_7, %c0_8] : memref<2x1024xf32, #tpu.memory_space<vmem>>, vector<2x1024xf32>
    tpu.vector_store %arg5[%c0_7, %c0_8], %6 {strides = array<i32>} : memref<2x1024xf32, #tpu.memory_space<vmem>>, vector<2x1024xf32>,
    %8 = arith.divf %0, %1 : vector<2x1024xf32>
    %c0_9 = arith.constant 0 : index
    %c0_10 = arith.constant 0 : index
    %9 = vector.load %arg6[%c0_9, %c0_10] : memref<2x1024xf32, #tpu.memory_space<vmem>>, vector<2x1024xf32>
    tpu.vector_store %arg6[%c0_9, %c0_10], %8 {strides = array<i32>} : memref<2x1024xf32, #tpu.memory_space<vmem>>, vector<2x1024xf32>,
    %10 = arith.mulf %0, %0 : vector<2x1024xf32>
    %c0_11 = arith.constant 0 : index
    %c0_12 = arith.constant 0 : index
    %11 = vector.load %arg7[%c0_11, %c0_12] : memref<2x1024xf32, #tpu.memory_space<vmem>>, vector<2x1024xf32>
    tpu.vector_store %arg7[%c0_11, %c0_12], %10 {strides = array<i32>} : memref<2x1024xf32, #tpu.memory_space<vmem>>, vector<2x1024xf32>,
    %12 = arith.cmpf ogt, %0, %1 : vector<2x1024xf32>
    %c0_13 = arith.constant 0 : index
    %c0_14 = arith.constant 0 : index
    %13 = vector.load %arg8[%c0_13, %c0_14] : memref<2x1024xi32, #tpu.memory_space<vmem>>, vector<2x1024xi32>
    %14 = arith.extui %12 : vector<2x1024xi1> to vector<2x1024xi32>
    %cst = arith.constant dense<0> : vector<2x1024xi32>
    %15 = arith.cmpi ne, %13, %cst : vector<2x1024xi32>
    tpu.vector_store %arg8[%c0_13, %c0_14], %14 {strides = array<i32>} : memref<2x1024xi32, #tpu.memory_space<vmem>>, vector<2x1024xi32>,
    %16 = arith.cmpf olt, %0, %1 : vector<2x1024xf32>
    %c0_15 = arith.constant 0 : index
    %c0_16 = arith.constant 0 : index
    %17 = vector.load %arg9[%c0_15, %c0_16] : memref<2x1024xi32, #tpu.memory_space<vmem>>, vector<2x1024xi32>
    %18 = arith.extui %16 : vector<2x1024xi1> to vector<2x1024xi32>
    %cst_17 = arith.constant dense<0> : vector<2x1024xi32>
    %19 = arith.cmpi ne, %17, %cst_17 : vector<2x1024xi32>
    tpu.vector_store %arg9[%c0_15, %c0_16], %18 {strides = array<i32>} : memref<2x1024xi32, #tpu.memory_space<vmem>>, vector<2x1024xi32>,
    %20 = arith.cmpf oeq, %0, %1 : vector<2x1024xf32>
    %c0_18 = arith.constant 0 : index
    %c0_19 = arith.constant 0 : index
    %21 = vector.load %arg10[%c0_18, %c0_19] : memref<2x1024xi32, #tpu.memory_space<vmem>>, vector<2x1024xi32>
    %22 = arith.extui %20 : vector<2x1024xi1> to vector<2x1024xi32>
    %cst_20 = arith.constant dense<0> : vector<2x1024xi32>
    %23 = arith.cmpi ne, %21, %cst_20 : vector<2x1024xi32>
    tpu.vector_store %arg10[%c0_18, %c0_19], %22 {strides = array<i32>} : memref<2x1024xi32, #tpu.memory_space<vmem>>, vector<2x1024xi32>,
    %24 = arith.cmpf oge, %0, %1 : vector<2x1024xf32>
    %c0_21 = arith.constant 0 : index
    %c0_22 = arith.constant 0 : index
    %25 = vector.load %arg11[%c0_21, %c0_22] : memref<2x1024xi32, #tpu.memory_space<vmem>>, vector<2x1024xi32>
    %26 = arith.extui %24 : vector<2x1024xi1> to vector<2x1024xi32>
    %cst_23 = arith.constant dense<0> : vector<2x1024xi32>
    %27 = arith.cmpi ne, %25, %cst_23 : vector<2x1024xi32>
    tpu.vector_store %arg11[%c0_21, %c0_22], %26 {strides = array<i32>} : memref<2x1024xi32, #tpu.memory_space<vmem>>, vector<2x1024xi32>,
    %28 = arith.cmpf ole, %0, %1 : vector<2x1024xf32>
    %c0_24 = arith.constant 0 : index
    %c0_25 = arith.constant 0 : index
    %29 = vector.load %arg12[%c0_24, %c0_25] : memref<2x1024xi32, #tpu.memory_space<vmem>>, vector<2x1024xi32>
    %30 = arith.extui %28 : vector<2x1024xi1> to vector<2x1024xi32>
    %cst_26 = arith.constant dense<0> : vector<2x1024xi32>
    %31 = arith.cmpi ne, %29, %cst_26 : vector<2x1024xi32>
    tpu.vector_store %arg12[%c0_24, %c0_25], %30 {strides = array<i32>} : memref<2x1024xi32, #tpu.memory_space<vmem>>, vector<2x1024xi32>,
    return
  }
  func.func @transform_0(%arg0: i32) -> (i32, i32) {
    %c0_i32 = arith.constant 0 : i32
    %c0_i32_0 = arith.constant 0 : i32
    return %arg0, %c0_i32 : i32, i32
  }
  func.func @transform_1(%arg0: i32) -> (i32, i32) {
    %c0_i32 = arith.constant 0 : i32
    %c0_i32_0 = arith.constant 0 : i32
    return %arg0, %c0_i32 : i32, i32
  }
  func.func @transform_2(%arg0: i32) -> (i32, i32) {
    %c0_i32 = arith.constant 0 : i32
    %c0_i32_0 = arith.constant 0 : i32
    return %arg0, %c0_i32 : i32, i32
  }
  func.func @transform_3(%arg0: i32) -> (i32, i32) {
    %c0_i32 = arith.constant 0 : i32
    %c0_i32_0 = arith.constant 0 : i32
    return %arg0, %c0_i32 : i32, i32
  }
  func.func @transform_4(%arg0: i32) -> (i32, i32) {
    %c0_i32 = arith.constant 0 : i32
    %c0_i32_0 = arith.constant 0 : i32
    return %arg0, %c0_i32 : i32, i32
  }
  func.func @transform_5(%arg0: i32) -> (i32, i32) {
    %c0_i32 = arith.constant 0 : i32
    %c0_i32_0 = arith.constant 0 : i32
    return %arg0, %c0_i32 : i32, i32
  }
  func.func @transform_6(%arg0: i32) -> (i32, i32) {
    %c0_i32 = arith.constant 0 : i32
    %c0_i32_0 = arith.constant 0 : i32
    return %arg0, %c0_i32 : i32, i32
  }
  func.func @transform_7(%arg0: i32) -> (i32, i32) {
    %c0_i32 = arith.constant 0 : i32
    %c0_i32_0 = arith.constant 0 : i32
    return %arg0, %c0_i32 : i32, i32
  }
  func.func @transform_8(%arg0: i32) -> (i32, i32) {
    %c0_i32 = arith.constant 0 : i32
    %c0_i32_0 = arith.constant 0 : i32
    return %arg0, %c0_i32 : i32, i32
  }
  func.func @transform_9(%arg0: i32) -> (i32, i32) {
    %c0_i32 = arith.constant 0 : i32
    %c0_i32_0 = arith.constant 0 : i32
    return %arg0, %c0_i32 : i32, i32
  }
  func.func @transform_10(%arg0: i32) -> (i32, i32) {
    %c0_i32 = arith.constant 0 : i32
    %c0_i32_0 = arith.constant 0 : i32
    return %arg0, %c0_i32 : i32, i32
  }
  func.func @transform_11(%arg0: i32) -> (i32, i32) {
    %c0_i32 = arith.constant 0 : i32
    %c0_i32_0 = arith.constant 0 : i32
    return %arg0, %c0_i32 : i32, i32
  }
}

</mosaic_0001>

<bundles_post_ra>
// kernel: tpu_custom_call.1
= control target key start
LH: loop header
LB: loop body
LE: loop exit
PB: predicated region body
PF: predicated region fallthrough
CT: control target
= control target key end

     0   :  { %17 = vsyncpa [#allocation3], 0  ;;  %s537_s0 = inlined_call_operand.hbm [shape: f32[2,1024], index: 0, kind: input, shape index: {}]   ;;  %s538_s1 = inlined_call_operand.hbm [shape: f32[2,1024], index: 1, kind: input, shape index: {}]   ;;  %s539_s2 = inlined_call_operand.hbm [shape: f32[2,1024], index: 2, kind: output, shape index: {0}]   ;;  %s540_s3 = inlined_call_operand.hbm [shape: f32[2,1024], index: 3, kind: output, shape index: {1}]   ;;  %s541_s4 = inlined_call_operand.hbm [shape: f32[2,1024], index: 4, kind: output, shape index: {2}]   ;;  %s542_s5 = inlined_call_operand.hbm [shape: f32[2,1024], index: 5, kind: output, shape index: {3}]   ;;  %s543_s6 = inlined_call_operand.hbm [shape: f32[2,1024], index: 6, kind: output, shape index: {4}]   ;;  %s544_s7 = inlined_call_operand.vmem [shape: s32[2,1024], index: 7, kind: output, shape index: {5}]   ;;  %s545_s8 = inlined_call_operand.vmem [shape: s32[2,1024], index: 8, kind: output, shape index: {6}]   ;;  %s546_s9 = inlined_call_operand.vmem [shape: s32[2,1024], index: 9, kind: output, shape index: {7}]   ;;  %s547_s10 = inlined_call_operand.vmem [shape: s32[2,1024], index: 10, kind: output, shape index: {8}]   ;;  %s548_s11 = inlined_call_operand.vmem [shape: s32[2,1024], index: 11, kind: output, shape index: {9}]  }
   0x1   :  { %18 = vsyncpa [#allocation6], 0 }
   0x2   :  { %19 = vsyncpa [#allocation4], 0 }
   0x3   :  { %20 = vsyncpa [#allocation9], 0 }
   0x4   :  { %21 = vsyncpa [#allocation12], 0  ;;  %s356_s17 = smov [#allocation2]   ;;  %s357_s19 = smov [#allocation5]  }
   0x5   :  { %s28_s18 = sshll.u32 %s356_s17, 4  ;;  %s38_s20 = sshll.u32 %s357_s19, 4  ;;  %s29_s18 = int_to_ptr.vmem [resolvable:$true] %s28_s18  ;;  %s39_s20 = int_to_ptr.vmem [resolvable:$true] %s38_s20 }
   0x6   :  { %s214_s21 = scalar_lea.vmem %s29_s18, 256  ;;  %p219_p1 = scmp.lt.s32.totalorder %s29_s18, %s29_s18 }
   0x7   :  { %p215_p0 = scmp.ne.s32.totalorder %s29_s18, %s214_s21  ;;  %p220_p2 = scmp.lt.s32.totalorder %s214_s21, %s214_s21 }
   0x9   :  { %p221_p3 = por %p220_p2, %p219_p1 }
   0xb   :  { %p222_p4 = pnand %p221_p3, %p215_p0 }
   0xd   :  { %225 = shalt.err (!%p222_p4)
}
   0xe   :  { %31 = dma.hbm_to_vmem [thread:$0]  %s537_s0, 256, %s29_s18, [#allocation3]  }
   0xf   :  { %s234_s24 = scalar_lea.vmem %s39_s20, 256  ;;  %p239_p6 = scmp.lt.s32.totalorder %s39_s20, %s39_s20 }
  0x10   :  { %p235_p5 = scmp.ne.s32.totalorder %s39_s20, %s234_s24  ;;  %p240_p7 = scmp.lt.s32.totalorder %s234_s24, %s234_s24 }
  0x12   :  { %p241_p8 = por %p240_p7, %p239_p6 }
  0x14   :  { %p242_p9 = pnand %p241_p8, %p235_p5 }
  0x16   :  { %245 = shalt.err (!%p242_p9)
}
  0x17   :  { %41 = dma.hbm_to_vmem [thread:$0]  %s538_s1, 256, %s39_s20, [#allocation6]  }
  0x18   :  { %346 = dma.done.wait [#allocation3], 256  }
  0x19   :  { %347 = vsyncadd [#allocation3], 4294967040 }
  0x1a   :  { %348 = dma.done.wait [#allocation6], 256  }
  0x1b   :  { %349 = vsyncadd [#allocation6], 4294967040  ;;  %s358_s27 = smov [#allocation8]   ;;  %v430_v0 = vld [vmem:[#allocation2] sm:$0xff]  ;;  %v432_v1 = vld [vmem:[#allocation5] sm:$0xff]  ;;  %s359_s0 = smov [#allocation7]  }
  0x1c   :  { %s120_s28 = sshll.u32 %s358_s27, 4  ;;  %v434_v2 = vld [vmem:[#allocation2 + $0x8] sm:$0xff]  ;;  %s110_s29 = sshll.u32 %s359_s0, 4  ;;  %v56_v3 = vsub.f32 %v430_v0, %v432_v1  ;;  %v438_v4 = vld [vmem:[#allocation5 + $0x8] sm:$0xff]  ;;  %202 = vrcp.f32 %v432_v1  ;;  %v52_v5 = vadd.f32 %v432_v1, %v430_v0  ;;  %v60_v6 = vmul.f32 %v432_v1, %v430_v0  ;;  %s121_s28 = int_to_ptr.vmem [resolvable:$true] %s120_s28  ;;  %s460_s29 = int_to_ptr.vmem [resolvable:$true] %s110_s29 }
  0x1d   :  { %s360_s1 = smov [#allocation10]   ;;  %v57_v7 = vsub.f32 %v434_v2, %v438_v4  ;;  %204 = vrcp.f32 %v438_v4  ;;  %v53_v8 = vadd.f32 %v438_v4, %v434_v2  ;;  %v61_v9 = vmul.f32 %v438_v4, %v434_v2  ;;  %s246_s12 = scalar_lea.vmem %s121_s28, 256 }
  0x1e   :  { %s130_s30 = sshll.u32 %s360_s1, 4  ;;  %58 = vst [vmem:[#allocation8] sm:$0xff] %v56_v3  ;;  %54 = vst [vmem:[#allocation7] sm:$0xff] %v52_v5  ;;  %v70_v10 = vmul.f32 %v430_v0, %v430_v0  ;;  %v71_v11 = vmul.f32 %v434_v2, %v434_v2  ;;  %vm74_vm0 = vcmp.gt.f32.partialorder %v430_v0, %v432_v1  ;;  %v361_v12 = vmov 0   ;;  %p247_p10 = scmp.ne.s32.totalorder %s121_s28, %s246_s12  ;;  %s466_s30 = int_to_ptr.vmem [resolvable:$true] %s130_s30 }
  0x1f   :  { %62 = vst [vmem:[#allocation10] sm:$0xff] %v60_v6  ;;  %vm75_vm1 = vcmp.gt.f32.partialorder %v434_v2, %v438_v4  ;;  %59 = vst [vmem:[#allocation8 + $0x8] sm:$0xff] %v57_v7  ;;  %v76_v13 = vsel %vm74_vm0, 1, %v361_v12  ;;  %vm80_vm2 = vcmp.lt.f32.partialorder %v430_v0, %v432_v1  ;;  %vm81_vm3 = vcmp.lt.f32.partialorder %v434_v2, %v438_v4  ;;  %p251_p11 = scmp.lt.s32.totalorder %s121_s28, %s121_s28  ;;  %p252_p12 = scmp.lt.s32.totalorder %s246_s12, %s246_s12 }
  0x20   :  { %55 = vst [vmem:[#allocation7 + $0x8] sm:$0xff] %v53_v8  ;;  %63 = vst [vmem:[#allocation10 + $0x8] sm:$0xff] %v61_v9  ;;  %v77_v14 = vsel %vm75_vm1, 1, %v361_v12 }
  0x21   :  { %72 = vst [vmem:[#allocation13] sm:$0xff] %v70_v10  ;;  %73 = vst [vmem:[#allocation13 + $0x8] sm:$0xff] %v71_v11  ;;  %p253_p13 = por %p252_p12, %p251_p11 }
  0x23   :  { %p254_p0 = pnand %p253_p13, %p247_p10 }
  0x25   :  { %257 = shalt.err (!%p254_p0)
}
  0x26   :  { %123 = dma.vmem_to_hbm [thread:$0]  %s121_s28, 256, %s540_s3, [#allocation9]   ;;  %78 = vst [vmem:[%s544_s7] sm:$0xff] %v76_v13  ;;  %79 = vst [vmem:[%s544_s7 + $0x8] sm:$0xff] %v77_v14  ;;  %v82_v15 = vsel %vm80_vm2, 1, %v361_v12  ;;  %v83_v16 = vsel %vm81_vm3, 1, %v361_v12  ;;  %vm86_vm4 = vcmp.eq.f32.partialorder %v430_v0, %v432_v1  ;;  %vm87_vm5 = vcmp.eq.f32.partialorder %v434_v2, %v438_v4 }
  0x27   :  { %84 = vst [vmem:[%s545_s8] sm:$0xff] %v82_v15  ;;  %85 = vst [vmem:[%s545_s8 + $0x8] sm:$0xff] %v83_v16  ;;  %v88_v17 = vsel %vm86_vm4, 1, %v361_v12  ;;  %v89_v18 = vsel %vm87_vm5, 1, %v361_v12  ;;  %vm92_vm6 = vcmp.ge.f32.partialorder %v430_v0, %v432_v1  ;;  %vm93_vm7 = vcmp.ge.f32.partialorder %v434_v2, %v438_v4  ;;  %s266_s7 = scalar_lea.vmem %s460_s29, 256  ;;  %p271_p2 = scmp.lt.s32.totalorder %s460_s29, %s460_s29 }
  0x28   :  { %p267_p1 = scmp.ne.s32.totalorder %s460_s29, %s266_s7  ;;  %p272_p3 = scmp.lt.s32.totalorder %s266_s7, %s266_s7 }
  0x2a   :  { %p273_p4 = por %p272_p3, %p271_p2 }
  0x2c   :  { %p274_p5 = pnand %p273_p4, %p267_p1 }
  0x2e   :  { %277 = shalt.err (!%p274_p5)
}
  0x2f   :  { %113 = dma.vmem_to_hbm [thread:$0]  %s460_s29, 256, %s539_s2, [#allocation4]   ;;  %90 = vst [vmem:[%s546_s9] sm:$0xff] %v88_v17  ;;  %91 = vst [vmem:[%s546_s9 + $0x8] sm:$0xff] %v89_v18  ;;  %v94_v19 = vsel %vm92_vm6, 1, %v361_v12  ;;  %v95_v20 = vsel %vm93_vm7, 1, %v361_v12  ;;  %vm98_vm8 = vcmp.le.f32.partialorder %v430_v0, %v432_v1  ;;  %vm99_vm9 = vcmp.le.f32.partialorder %v434_v2, %v438_v4 }
  0x30   :  { %s286_s27 = scalar_lea.vmem %s466_s30, 256  ;;  %p291_p7 = scmp.lt.s32.totalorder %s466_s30, %s466_s30 }
  0x31   :  { %p287_p6 = scmp.ne.s32.totalorder %s466_s30, %s286_s27  ;;  %p292_p8 = scmp.lt.s32.totalorder %s286_s27, %s286_s27 }
  0x33   :  { %p293_p9 = por %p292_p8, %p291_p7 }
  0x35   :  { %p294_p10 = pnand %p293_p9, %p287_p6 }
  0x37   :  { %297 = shalt.err (!%p294_p10)
}
  0x38   :  { %133 = dma.vmem_to_hbm [thread:$0]  %s466_s30, 256, %s541_s4, [#allocation9]   ;;  %96 = vst [vmem:[%s547_s10] sm:$0xff] %v94_v19  ;;  %97 = vst [vmem:[%s547_s10 + $0x8] sm:$0xff] %v95_v20  ;;  %v100_v21 = vsel %vm98_vm8, 1, %v361_v12  ;;  %v101_v22 = vsel %vm99_vm9, 1, %v361_v12  ;;  %v203_v23 = vpop.eup %202 }
  0x39   :  { %102 = vst [vmem:[%s548_s11] sm:$0xff] %v100_v21  ;;  %103 = vst [vmem:[%s548_s11 + $0x8] sm:$0xff] %v101_v22  ;;  %s362_s16 = smov [#allocation11]   ;;  %s363_s30 = smov [#allocation13]   ;;  %v205_v24 = vpop.eup %204  ;;  %v65_v25 = vmul.f32 %v203_v23, %v430_v0 }
  0x3a   :  { %s140_s4 = sshll.u32 %s362_s16, 4  ;;  %s150_s17 = sshll.u32 %s363_s30, 4  ;;  %v67_v26 = vmul.f32 %v205_v24, %v434_v2  ;;  %s141_s4 = int_to_ptr.vmem [resolvable:$true] %s140_s4  ;;  %s151_s17 = int_to_ptr.vmem [resolvable:$true] %s150_s17 }
  0x3b   :  { %68 = vst [vmem:[#allocation11] sm:$0xff] %v65_v25  ;;  %s306_s10 = scalar_lea.vmem %s141_s4, 256  ;;  %p311_p12 = scmp.lt.s32.totalorder %s141_s4, %s141_s4 }
  0x3c   :  { %69 = vst [vmem:[#allocation11 + $0x8] sm:$0xff] %v67_v26  ;;  %p307_p11 = scmp.ne.s32.totalorder %s141_s4, %s306_s10  ;;  %p312_p13 = scmp.lt.s32.totalorder %s306_s10, %s306_s10 }
  0x3e   :  { %p313_p0 = por %p312_p13, %p311_p12 }
  0x40   :  { %p314_p1 = pnand %p313_p0, %p307_p11 }
  0x42   :  { %317 = shalt.err (!%p314_p1)
}
  0x43   :  { %143 = dma.vmem_to_hbm [thread:$0]  %s141_s4, 256, %s542_s5, [#allocation12]  }
  0x44   :  { %s326_s19 = scalar_lea.vmem %s151_s17, 256  ;;  %p331_p3 = scmp.lt.s32.totalorder %s151_s17, %s151_s17 }
  0x45   :  { %p327_p2 = scmp.ne.s32.totalorder %s151_s17, %s326_s19  ;;  %p332_p4 = scmp.lt.s32.totalorder %s326_s19, %s326_s19 }
  0x47   :  { %p333_p5 = por %p332_p4, %p331_p3 }
  0x49   :  { %p334_p6 = pnand %p333_p5, %p327_p2 }
  0x4b   :  { %337 = shalt.err (!%p334_p6)
}
  0x4c   :  { %153 = dma.vmem_to_hbm [thread:$0]  %s151_s17, 256, %s543_s6, [#allocation12]  }
  0x4d   :  { %350 = dma.done.wait [#allocation4], 256  }
  0x4e   :  { %351 = vsyncadd [#allocation4], 4294967040 }
  0x4f   :  { %352 = dma.done.wait [#allocation9], 512  }
  0x50   :  { %353 = vsyncadd [#allocation9], 4294966784 }
  0x51   :  { %354 = dma.done.wait [#allocation12], 512  }
  0x52   :  { %355 = vsyncadd [#allocation12], 4294966784 }
  0x53   :  { %189 = vsyncpa [#allocation3], 1 }
  0x54   :  { %190 = vsyncpa [#allocation6], 1 }
  0x55   :  { %191 = vsyncpa [#allocation4], 1 }
  0x56   :  { %192 = vsyncpa [#allocation9], 1 }
  0x57   :  { %193 = vsyncpa [#allocation12], 1 }

</bundles_post_ra>
